<compile_context>
chip_gen: v7x
topology: tpu7x:2x2x1
jax: 0.10.0
libtpu: 0.0.40
codegen_flags: <defaults>
</compile_context>

<pallas_src>
import numpy as np
import jax
import jax.numpy as jnp
from jax.experimental import pallas as pl
from jax.experimental.pallas import tpu as pltpu

# ---- scaled-down hyper-parameters (module uses 768 / 128 / 100) -------------
HIDDEN_SIZE = 128          # stand-in for 768
L = MAX_LENGTH = 8         # stand-in for 128
NUM_REL = 4                # number of relations R
TRANSE_EMB_DIM = 32        # stand-in for 100
THRESHOLDS = [0.6, 0.6, 0.6, 0.6]
BATCH = 2
DTYPE = jnp.float32
WDTYPE = jnp.bfloat16      # MXU operand dtype (accumulation stays f32)


# =============================================================================
# Kernel A: four fused span heads, lane-dense (4, B*L) output
# =============================================================================
def _span_heads_kernel(x_ref, w_ref, b_ref, o_ref):
    # (4, H) x (B*L, H) contracted over H -> (4, B*L): heads on the sublane
    # axis, tokens on the lane axis (lane-dense store at full scale).
    logits = jax.lax.dot_general(
        w_ref[...], x_ref[...],
        dimension_numbers=(((1,), (1,)), ((), ())),
        preferred_element_type=jnp.float32)
    o_ref[...] = logits + b_ref[...]


def span_heads(x_flat, w4t, b4t):
    M = x_flat.shape[0]
    nh = w4t.shape[0]
    return pl.pallas_call(
        _span_heads_kernel,
        out_shape=jax.ShapeDtypeStruct((nh, M), DTYPE),
    )(x_flat, w4t, b4t)


# =============================================================================
# Kernel B: fused BRASK attention + composed span heads, both directions.
# grid = (2,) over direction; each step handles the full batch.
# =============================================================================
def _brask_attn_kernel(x_ref, hg_ref, vrow_ref,
                       wr_ref, wgw_ref, wxw_ref, wxgb_ref, wproj_ref,
                       biasl_ref, bhse_ref, spans_ref, out_ref):
    B, Ls, H = x_ref.shape
    R = wr_ref.shape[1]
    f32 = jnp.float32

    xb = x_ref[...].reshape(B * Ls, H)                                   # bf16

    # The only remaining (H, H) matmuls (MXU, bf16 operands, f32 accumulate).
    wx = jnp.dot(xb, wxw_ref[0], preferred_element_type=f32)             # (B*L, H)
    wg = jnp.dot(hg_ref[...], wgw_ref[0], preferred_element_type=f32)    # (B, H)
    wxg = wx.reshape(B, Ls, H) + wg[:, None, :] + wxgb_ref[0]            # (B, L, H)

    # Composed span-head projections in a single thin matmul:
    #   cols 0:2 = x@wse, 2:4 = x@(Wx2@wse), 4:6 = x@(Wh@wse)
    xproj = jnp.dot(xb, wproj_ref[0], preferred_element_type=f32)        # (B*L, 6)

    wr = wr_ref[0]                                                       # (R, H) precomposed rel@W_r + b_r
    vrow = vrow_ref[...]                                                 # (1, H)

    # Attention energies, one relation slab at a time: bounds the live
    # intermediate to a single (B, L, H) slab.  tanh kept in f32 (v5e-safe).
    ve_rows = []
    for r in range(R):                                   # R is a static constant
        e_r = jnp.tanh(wxg + wr[r][None, None, :])                       # (B, L, H)
        # V bias omitted: constant along the softmax (L) axis, cancels exactly.
        ve_r = jax.lax.dot_general(                                      # MXU dot, (B*L, 1)
            e_r.reshape(B * Ls, H), vrow,
            dimension_numbers=(((1,), (1,)), ((), ())),
            preferred_element_type=f32)
        ve_rows.append(ve_r.reshape(B, 1, Ls))
    v_e = jnp.concatenate(ve_rows, axis=1)                               # (B, R, L)

    # softmax over the sequence axis (torch dim=1).
    m = jnp.max(v_e, axis=-1, keepdims=True)
    p = jnp.exp(v_e - m)
    A = p / jnp.sum(p, axis=-1, keepdims=True)                           # (B, R, L)

    # s_r[b,r,:] = (sum_l A[b,r,l] x[b,l]) @ wse  ==  A @ (x @ wse)
    xw3 = xproj[:, 0:2].reshape(B, Ls, 2)
    s_r = jnp.einsum('brl,blk->brk', A, xw3, preferred_element_type=f32) # (B, R, 2)

    # Hik path, fully composed down to 2 lanes.  The span-mean selection
    # matrix S[b, n, l] is rebuilt on-chip from host-provided (start, end).
    sp = spans_ref[0]                                                    # (4, B, L)
    st = sp[0][:, :, None]
    en = sp[1][:, :, None]
    sw = sp[2][:, :, None]                                               # mask / span_len
    mk = sp[3][:, :, None]                                               # mask
    li = jax.lax.broadcasted_iota(f32, (1, 1, Ls), 2)
    S = jnp.where((li >= st) & (li <= en), sw, 0.0)                      # (B, L, L)
    xwh3 = xproj[:, 4:6].reshape(B, Ls, 2)
    pe_c = jnp.einsum('bnl,blk->bnk', S, xwh3,
                      preferred_element_type=f32)                        # (B, L, 2)
    pe_c = pe_c + mk * bhse_ref[0]                                       # + mask * (b_h @ wse)

    s_l = xproj[:, 0:2] + xproj[:, 2:4] + pe_c.reshape(B * Ls, 2) + biasl_ref[0]
    s_l3 = s_l.reshape(B, Ls, 2)

    start = s_r[:, :, 0:1] + s_l3[:, :, 0][:, None, :]                   # (B, R, L)
    end = s_r[:, :, 1:2] + s_l3[:, :, 1][:, None, :]                     # (B, R, L)
    # (start/end, B, R) merged on the sublane axis, sequence length on lanes.
    out_ref[0] = jnp.stack([start, end], axis=0).reshape(2 * B * R, Ls)


def brask_attn_fused(x_bf, hg_bf, vrow, wr2, wgw2, wxw2, wxgb2,
                     wproj2, biasl2, bhse2, spans2):
    B, Ls, H = x_bf.shape
    R = wr2.shape[1]

    def shared(shape):
        n = len(shape)
        return pl.BlockSpec(shape, lambda d, n=n: (0,) * n)

    def per_dir(shape):
        n = len(shape)
        return pl.BlockSpec((1,) + shape, lambda d, n=n: (d,) + (0,) * n)

    in_specs = [
        shared((B, Ls, H)),      # token embeddings (bf16, shared)
        shared((B, H)),          # h_g (bf16, shared)
        shared((1, H)),          # V weight row (shared; bias cancels in softmax)
        per_dir((R, H)),         # rel @ W_r + b_r (precomposed per direction)
        per_dir((H, H)),         # W_g
        per_dir((H, H)),         # W_x
        per_dir((1, H)),         # b_x + b_g
        per_dir((H, 6)),         # [wse | Wx2@wse | Wh@wse]
        per_dir((1, 2)),         # b_se + b_x2@wse
        per_dir((1, 2)),         # b_h@wse
        per_dir((4, B, Ls)),     # span [start, end, mask/len, mask]
    ]
    out_specs = pl.BlockSpec((1, 2 * B * R, Ls), lambda d: (d, 0, 0))
    out_shape = jax.ShapeDtypeStruct((2, 2 * B * R, Ls), DTYPE)

    # TODO(synk): on v7x use pltpu.CORE_PARALLEL (or pl.core_map) on the
    # direction axis; "parallel" kept for portability to single-TC chips.
    return pl.pallas_call(
        _brask_attn_kernel,
        grid=(2,),
        in_specs=in_specs,
        out_specs=out_specs,
        out_shape=out_shape,
        compiler_params=pltpu.CompilerParams(
            dimension_semantics=("parallel",),
            vmem_limit_bytes=32 * 1024 * 1024),
    )(x_bf, hg_bf, vrow, wr2, wgw2, wxw2, wxgb2, wproj2, biasl2, bhse2, spans2)


# =============================================================================
# Host-side greedy span matching (mirrors PyTorch extract_first_embeddings,
# but returns only (start, end, 1/len, mask) indices; pooling runs on device).
# =============================================================================
# TODO(synk): data-dependent greedy start/end matching with variable entity
# counts has no clean Pallas equivalent; executed on host in NumPy.
def extract_span_indices_np(start_probs, end_probs, max_len, threshold):
    B, _ = start_probs.shape
    out = np.zeros((4, B, max_len), dtype=np.float32)   # [start, end, mask/len, mask]
    start_mask = start_probs > threshold
    end_mask = end_probs > threshold
    for b in range(B):
        starts = np.where(start_mask[b])[0]
        ends = np.where(end_mask[b])[0]
        used_ends = set()
        n = 0
        for s in starts.tolist():
            ptr = 0
            while ptr < len(ends) and (int(ends[ptr]) < s or int(ends[ptr]) in used_ends):
                ptr += 1
            if ptr < len(ends):
                e = int(ends[ptr])
                used_ends.add(e)
                if n < max_len:
                    out[0, b, n] = float(s)
                    out[1, b, n] = float(e)
                    out[2, b, n] = 1.0 / float(e + 1 - s)
                    out[3, b, n] = 1.0
                n += 1
    return out


# =============================================================================
# Parameter init (deterministic, synthetic — no checkpoint loading)
# =============================================================================
def init_params(key):
    keys = iter(jax.random.split(key, 48))

    def lin(in_dim, out_dim, scale=0.05):
        w = (jax.random.normal(next(keys), (in_dim, out_dim)) * scale).astype(DTYPE)
        b = (jax.random.normal(next(keys), (1, out_dim)) * 0.01).astype(DTYPE)
        return w, b   # stored as (in, out): y = x @ w + b  (== torch x @ W.T + b)

    p = {}
    p['rel_embs'] = (jax.random.normal(next(keys), (NUM_REL, HIDDEN_SIZE)) * 0.5).astype(DTYPE)
    p['rel_transe_embs'] = (jax.random.normal(next(keys), (NUM_REL, TRANSE_EMB_DIM)) * 0.5).astype(DTYPE)
    p['r_proj'] = lin(TRANSE_EMB_DIM, HIDDEN_SIZE)
    for name in ['f_start_head_fc', 'f_end_head_fc', 'f_start_tail_fc', 'f_end_tail_fc',
                 'b_start_tail_fc', 'b_end_tail_fc', 'b_start_head_fc', 'b_end_head_fc', 'V']:
        p[name] = lin(HIDDEN_SIZE, 1)
    for name in ['f_W_h', 'b_W_t', 'f_W_r', 'f_W_g', 'f_W_x',
                 'b_W_r', 'b_W_g', 'b_W_x', 'f_Wx2', 'b_Wx2']:
        p[name] = lin(HIDDEN_SIZE, HIDDEN_SIZE)
    return p


# =============================================================================
# Full forward pass
# =============================================================================
def brask_forward(params, ds_batch):
    h_gs = ds_batch['h_gs']          # (B, H)
    token_embs = ds_batch['embs']    # (B, L, H)
    B, Ls, H = token_embs.shape
    R = params['rel_embs'].shape[0]

    x_bf = token_embs.astype(WDTYPE)
    hg_bf = h_gs.astype(WDTYPE)

    # Backward relation embeddings: tiny (R,T)@(T,H) — plain jnp (XLA fuses it).
    b_rel = jnp.dot(params['rel_transe_embs'], params['r_proj'][0]) + params['r_proj'][1]

    # ---- Kernel A: 4 fused span heads, lane-dense (4, B*L) output ----------
    w4t = jnp.concatenate(
        [params['f_start_head_fc'][0], params['f_end_head_fc'][0],
         params['b_start_tail_fc'][0], params['b_end_tail_fc'][0]],
        axis=1).T.astype(WDTYPE)                                        # (4, H)
    b4t = jnp.concatenate(
        [params['f_start_head_fc'][1], params['f_end_head_fc'][1],
         params['b_start_tail_fc'][1], params['b_end_tail_fc'][1]],
        axis=1).T                                                       # (4, 1)
    logits4t = span_heads(x_bf.reshape(B * Ls, H), w4t, b4t)            # (4, B*L)
    logits4 = jnp.transpose(logits4t.reshape(4, B, Ls), (1, 2, 0))      # (B, L, 4)

    # ---- Host: greedy span matching (only the tiny logits cross PCIe) ------
    l4 = np.asarray(jax.device_get(logits4t)).reshape(4, B, Ls)
    p4 = 1.0 / (1.0 + np.exp(-l4.astype(np.float64)))
    # forward uses f_head_threshold (THRESHOLDS[0]); backward uses
    # b_tail_threshold (THRESHOLDS[1]) for both start and end, as in the module.
    f_sp = extract_span_indices_np(p4[0], p4[1], Ls, THRESHOLDS[0])
    b_sp = extract_span_indices_np(p4[2], p4[3], Ls, THRESHOLDS[1])
    spans2 = jnp.asarray(np.stack([f_sp, b_sp]), dtype=DTYPE)           # (2, 4, B, L)

    # ---- Wrapper-side weight composition (pure algebra on parameters) ------
    def compose(start_fc, end_fc, wx2_lin, wh_lin, rel, wr_lin, wg_lin, wx_lin):
        wse = jnp.concatenate([start_fc[0], end_fc[0]], axis=1)         # (H, 2)
        bse = jnp.concatenate([start_fc[1], end_fc[1]], axis=1)         # (1, 2)
        wproj = jnp.concatenate([wse, wx2_lin[0] @ wse, wh_lin[0] @ wse], axis=1)  # (H, 6)
        bias_l = bse + wx2_lin[1] @ wse                                 # (1, 2)
        bh_se = wh_lin[1] @ wse                                         # (1, 2)
        wr2 = rel @ wr_lin[0] + wr_lin[1]                               # (R, H)
        wxgb = wx_lin[1] + wg_lin[1]                                    # (1, H)
        return wproj, bias_l, bh_se, wr2, wxgb, wg_lin[0], wx_lin[0]

    f_parts = compose(params['f_start_tail_fc'], params['f_end_tail_fc'],
                      params['f_Wx2'], params['f_W_h'], params['rel_embs'],
                      params['f_W_r'], params['f_W_g'], params['f_W_x'])
    b_parts = compose(params['b_start_head_fc'], params['b_end_head_fc'],
                      params['b_Wx2'], params['b_W_t'], b_rel,
                      params['b_W_r'], params['b_W_g'], params['b_W_x'])

    wproj2 = jnp.stack([f_parts[0], b_parts[0]]).astype(WDTYPE)         # (2, H, 6)
    biasl2 = jnp.stack([f_parts[1], b_parts[1]])                        # (2, 1, 2)
    bhse2 = jnp.stack([f_parts[2], b_parts[2]])                         # (2, 1, 2)
    wr2 = jnp.stack([f_parts[3], b_parts[3]])                           # (2, R, H)
    wxgb2 = jnp.stack([f_parts[4], b_parts[4]])                         # (2, 1, H)
    wgw2 = jnp.stack([f_parts[5], b_parts[5]]).astype(WDTYPE)           # (2, H, H)
    wxw2 = jnp.stack([f_parts[6], b_parts[6]]).astype(WDTYPE)           # (2, H, H)

    vrow = params['V'][0].T                                             # (1, H); V bias cancels in softmax

    out = brask_attn_fused(x_bf, hg_bf, vrow, wr2, wgw2, wxw2, wxgb2,
                           wproj2, biasl2, bhse2, spans2)               # (2, 2*B*R, L)

    # Back to the PyTorch (B, L, R) layout in the JAX wrapper.
    out5 = out.reshape(2, 2, B, R, Ls)
    f_ts = jnp.transpose(out5[0, 0], (0, 2, 1))
    f_te = jnp.transpose(out5[0, 1], (0, 2, 1))
    b_hs = jnp.transpose(out5[1, 0], (0, 2, 1))
    b_he = jnp.transpose(out5[1, 1], (0, 2, 1))

    return {
        'forward': {'head_s': logits4[..., 0:1],      # (B, L, 1)
                    'head_e': logits4[..., 1:2],      # (B, L, 1)
                    'tail_s': f_ts,                   # (B, L, R)
                    'tail_e': f_te},                  # (B, L, R)
        'backward': {'tail_s': logits4[..., 2:3],     # (B, L, 1)
                     'tail_e': logits4[..., 3:4],     # (B, L, 1)
                     'head_s': b_hs,                  # (B, L, R)
                     'head_e': b_he},                 # (B, L, R)
    }


if __name__ == "__main__":
    key = jax.random.PRNGKey(0)
    kp, kx, kh = jax.random.split(key, 3)
    params = init_params(kp)

    token_embs = jax.random.normal(kx, (BATCH, L, HIDDEN_SIZE), dtype=DTYPE)
    h_gs = jax.random.normal(kh, (BATCH, HIDDEN_SIZE), dtype=DTYPE)
    ds_batch = {'h_gs': h_gs, 'embs': token_embs}

    out = brask_forward(params, ds_batch)
    for leaf in jax.tree_util.tree_leaves(out):
        jax.block_until_ready(leaf)
    print("KERNEL_OK")
</pallas_src>

<mosaic_0001>
module attributes {stable_mosaic.version = 11 : i64} {
  func.func @_span_heads_kernel(%arg0: memref<16x128xbf16, #tpu.memory_space<vmem>>, %arg1: memref<4x128xbf16, #tpu.memory_space<vmem>>, %arg2: memref<4x1xf32, #tpu.memory_space<vmem>>, %arg3: memref<4x16xf32, #tpu.memory_space<vmem>>) attributes {dimension_semantics = [], scalar_prefetch = 0 : i64, scratch_operands = 0 : i64, tpu.core_type = #tpu.core_type<tc>} {
    %c0 = arith.constant 0 : index
    %c0_0 = arith.constant 0 : index
    %0 = vector.load %arg1[%c0, %c0_0] : memref<4x128xbf16, #tpu.memory_space<vmem>>, vector<4x128xbf16>
    %c0_1 = arith.constant 0 : index
    %c0_2 = arith.constant 0 : index
    %1 = vector.load %arg0[%c0_1, %c0_2] : memref<16x128xbf16, #tpu.memory_space<vmem>>, vector<16x128xbf16>
    %cst = arith.constant dense<0.000000e+00> : vector<4x16xf32>
    %2 = tpu.matmul %0, %1, %cst {dimension_numbers = #tpu.dot_dimension_numbers<[1], [1], [0], [0], [0, 0, 1, 0], [], []>} : vector<4x128xbf16>, vector<16x128xbf16>, vector<4x16xf32> -> vector<4x16xf32>
    %c0_3 = arith.constant 0 : index
    %c0_4 = arith.constant 0 : index
    %3 = vector.load %arg2[%c0_3, %c0_4] : memref<4x1xf32, #tpu.memory_space<vmem>>, vector<4x1xf32>
    %4 = vector.broadcast %3 : vector<4x1xf32> to vector<4x16xf32>
    %5 = arith.addf %2, %4 : vector<4x16xf32>
    %c0_5 = arith.constant 0 : index
    %c0_6 = arith.constant 0 : index
    %6 = vector.load %arg3[%c0_5, %c0_6] : memref<4x16xf32, #tpu.memory_space<vmem>>, vector<4x16xf32>
    tpu.vector_store %arg3[%c0_5, %c0_6], %5 {strides = array<i32>} : memref<4x16xf32, #tpu.memory_space<vmem>>, vector<4x16xf32>,
    return
  }
}

</mosaic_0001>

<bundles_post_ra>
// kernel: tpu_custom_call.1
= control target key start
LH: loop header
LB: loop body
LE: loop exit
PB: predicated region body
PF: predicated region fallthrough
CT: control target
= control target key end

     0   :  { %8 = vsyncpa [#allocation3], 0  ;;  %s225_s0 = inlined_call_operand.hbm [shape: bf16[16,128], index: 0, kind: input, shape index: {}]   ;;  %s226_s1 = inlined_call_operand.vmem [shape: bf16[4,128], index: 1, kind: input, shape index: {}]   ;;  %s227_s2 = inlined_call_operand.vmem [shape: f32[4,1], index: 2, kind: input, shape index: {}]   ;;  %s228_s3 = inlined_call_operand.hbm [shape: f32[4,16], index: 3, kind: output, shape index: {}]  }
   0x1   :  { %9 = vsyncpa [#allocation4], 0  ;;  %s168_s12 = smov [#allocation2]   ;;  %s120_s16 = scalar_lea.hbm %s225_s0, 128 }
   0x2   :  { %s15_s13 = sshll.u32 %s168_s12, 4  ;;  %p121_p0 = scmp.ne.s32.totalorder %s225_s0, %s120_s16  ;;  %s16_s13 = int_to_ptr.vmem [resolvable:$true] %s15_s13 }
   0x3   :  { %p124_p1 = scmp.lt.u32.totalorder %s120_s16, %s225_s0 }
   0x5   :  { %p126_p2 = pnand %p124_p1, %p121_p0 }
   0x7   :  { %129 = shalt.err (!%p126_p2)
}
   0x8   :  { %s130_s21 = scalar_lea.vmem %s16_s13, 128  ;;  %p135_p4 = scmp.lt.s32.totalorder %s16_s13, %s16_s13 }
   0x9   :  { %p131_p3 = scmp.ne.s32.totalorder %s16_s13, %s130_s21  ;;  %p136_p5 = scmp.lt.s32.totalorder %s130_s21, %s130_s21 }
   0xb   :  { %p137_p6 = por %p136_p5, %p135_p4 }
   0xd   :  { %p138_p7 = pnand %p137_p6, %p131_p3 }
   0xf   :  { %141 = shalt.err (!%p138_p7)
}
  0x10   :  { %s169_s22 = smov 64   ;;  %s170_s23 = smov 4  }
  0x11   :  { %21 = dma.hbm_to_vmem [thread:$0]  %s225_s0, 128, %s16_s13, [#allocation3], %s169_s22, %s169_s22, %s170_s23  }
  0x12   :  { %164 = dma.done.wait [#allocation3], 128  }
  0x13   :  { %165 = vsyncadd [#allocation3], 4294967168  ;;  %v171_v0 = vmov 0.0   ;;  %vm172_vm0 = vmmov 0   ;;  %v173_v1 = vmov 0   ;;  %v119_v2 = vld [vmem:[#allocation2] sm:$0xff]  }
  0x14   :  { %105 = vmatprep.subr.bf16.mxu0 %v171_v0  ;;  %107 = vmatprep.mubr.msk.bf16.mxu0 %vm172_vm0, %v171_v0  ;;  %v33_v3 = vld [vmem:[%s227_s2] sm:$0xf]  ;;  %s174_s0 = smov [#allocation5]   ;;  %vm85_vm1 = vcmask 125952  }
  0x15   :  { %118 = vset.pattern.permute.xlu0 %v173_v1  ;;  %106 = vmatpush3.bf16.xpose.msra.mxu0 %v119_v2  ;;  %v30_v4 = vld [vmem:[%s226_s1] sm:$0x3]  ;;  %s93_s30 = sshll.u32 %s174_s0, 4  ;;  %s94_s30 = int_to_ptr.vmem [resolvable:$true] %s93_s30 }
  0x16   :  { %36 = vperm.xlu0 %118, %v33_v3   ;;  %s142_s4 = scalar_lea.vmem %s94_s30, 64  ;;  %p147_p9 = scmp.lt.s32.totalorder %s94_s30, %s94_s30 }
  0x17   :  { %p143_p8 = scmp.ne.s32.totalorder %s94_s30, %s142_s4  ;;  %p148_p10 = scmp.lt.s32.totalorder %s142_s4, %s142_s4 }
  0x19   :  { %p149_p11 = por %p148_p10, %p147_p9 }
  0x1b   :  { %p150_p12 = pnand %p149_p11, %p143_p8 }
  0x1c   :  { %108 = vmatmul.mubr.bf16.vlgmr.msra.gmra.mrb[0].mxu0 %v30_v4 }
  0x95   :  { %v37_v5 = vpop.permute.xlu0 %36 }
  0xef   :  { %v79_v6 = vpop.f32.mrb[0].mxu0 }
  0xf0   :  { %v80_v7 = vadd.f32 %v79_v6, %v37_v5  ;;  %v109_v8 = vpop.f32.mrb[1].mxu0 }
  0xf1   :  { %v82_v9 = vpop.f32.mrb[2].mxu0 }
  0xf2   :  { %v110_v10 = vpop.f32.mrb[3].mxu0  ;;  %86 = vst.msk [vmem:[#allocation5] sm:$0xf] %vm85_vm1, %v80_v7 }
  0xf3   :  { %153 = shalt.err (!%p150_p12)
}
  0xf4   :  { %s154_s5 = scalar_lea.hbm %s228_s3, 64 }
  0xf5   :  { %p155_p13 = scmp.ne.s32.totalorder %s228_s3, %s154_s5  ;;  %p158_p0 = scmp.lt.u32.totalorder %s154_s5, %s228_s3 }
  0xf7   :  { %p160_p1 = pnand %p158_p0, %p155_p13 }
  0xf9   :  { %163 = shalt.err (!%p160_p1)
}
  0xfa   :  { %96 = dma.vmem_to_hbm [thread:$0]  %s94_s30, 64, %s228_s3, [#allocation4]  }
  0xfb   :  { %166 = dma.done.wait [#allocation4], 64  }
  0xfc   :  { %167 = vsyncadd [#allocation4], 4294967232 }
  0xfd   :  { %100 = vsyncpa [#allocation3], 1 }
  0xfe   :  { %101 = vsyncpa [#allocation4], 1 }

</bundles_post_ra>
